<compile_context>
chip_gen: v5e
topology: v5e:2x2
jax: 0.10.0
libtpu: 0.0.40
codegen_flags: <defaults>
</compile_context>

<pallas_src>
import functools

import jax
import jax.numpy as jnp
from jax.experimental import pallas as pl
from jax.experimental.pallas import tpu as pltpu

HIDDEN1 = 16
HIDDEN2 = 8
MAX_TILE_B = 32768  # keeps double-buffered x tile + intermediates well under v7x's scoped VMEM


def _align8(n):
    return ((n + 7) // 8) * 8


def _param_layout(d_in):
    """Static sublane offsets of each parameter inside the packed slab."""
    r_w1 = 0                              # w1^T : (HIDDEN1, d_in)
    r_w2 = r_w1 + _align8(HIDDEN1)        # w2^T : (HIDDEN2, HIDDEN1)
    r_b1 = r_w2 + _align8(HIDDEN2)        # b1   : (HIDDEN1, 1) column
    r_b2 = r_b1 + _align8(HIDDEN1)        # b2   : (HIDDEN2, 1) column
    r_w3 = r_b2 + _align8(HIDDEN2)        # w3   : (HIDDEN2, 1) column
    r_b3 = r_w3 + _align8(HIDDEN2)        # b3   : (1, 1)
    rows = _align8(r_b3 + 1)
    cols = ((max(d_in, HIDDEN1) + 127) // 128) * 128
    return (r_w1, r_w2, r_b1, r_b2, r_w3, r_b3), rows, cols


def pack_params(params, d_in):
    """Pack (w1,b1,w2,b2,w3,b3) into one tile-aligned f32 slab (single DMA)."""
    w1, b1, w2, b2, w3, b3 = params
    (r_w1, r_w2, r_b1, r_b2, r_w3, r_b3), rows, cols = _param_layout(d_in)
    slab = jnp.zeros((rows, cols), jnp.float32)
    slab = slab.at[r_w1:r_w1 + HIDDEN1, :d_in].set(w1.T.astype(jnp.float32))
    slab = slab.at[r_w2:r_w2 + HIDDEN2, :HIDDEN1].set(w2.T.astype(jnp.float32))
    slab = slab.at[r_b1:r_b1 + HIDDEN1, 0].set(b1.reshape(-1).astype(jnp.float32))
    slab = slab.at[r_b2:r_b2 + HIDDEN2, 0].set(b2.reshape(-1).astype(jnp.float32))
    slab = slab.at[r_w3:r_w3 + HIDDEN2, 0].set(w3.reshape(-1).astype(jnp.float32))
    slab = slab.at[r_b3, 0].set(b3.reshape(-1)[0].astype(jnp.float32))
    return slab


def _choose_tile(B):
    """Scale tile_b with the batch.

    - B <= MAX_TILE_B: one grid step (no padding), or two lane-aligned steps when B
      splits cleanly so both v7x TensorCores get a tile under ("parallel",).
    - Huge B: largest lane-aligned tile that divides B (no jnp.pad copy); only if no
      such tile exists do we fall back to a padded tail.
    """
    if B <= MAX_TILE_B:
        if B >= 512 and B % 256 == 0:
            return B // 2
        return B
    for t in range(MAX_TILE_B, 127, -128):
        if B % t == 0:
            return t
    return MAX_TILE_B  # rare fallback: needs a padded tail


def q_network_kernel(x_ref, p_ref, out_ref, *, d_in, offs):
    r_w1, r_w2, r_b1, r_b2, r_w3, r_b3 = offs
    # bf16 inputs only save DMA bytes; all math is f32 (v5e has no bf16 VPU/EUP).
    x = x_ref[...].astype(jnp.float32)                       # (d_in, tile_b), batch on lanes

    # Static, tile-aligned views into the VMEM-resident parameter slab.
    w1t = p_ref[r_w1:r_w1 + HIDDEN1, 0:d_in]                 # (16, d_in)
    w2t = p_ref[r_w2:r_w2 + HIDDEN2, 0:HIDDEN1]              # (8, 16)
    b1c = p_ref[r_b1:r_b1 + HIDDEN1, 0:1]                    # (16, 1)
    b2c = p_ref[r_b2:r_b2 + HIDDEN2, 0:1]                    # (8, 1)
    w3c = p_ref[r_w3:r_w3 + HIDDEN2, 0:1]                    # (8, 1)
    b3 = p_ref[r_b3:r_b3 + 1, 0:1]                           # (1, 1)

    # Layer 1 (MXU): x is already feature-major -> plain matmul, no transpose needed.
    a1 = jnp.dot(w1t, x, preferred_element_type=jnp.float32)          # (16, tile_b)
    h1 = jnp.tanh(a1 + b1c)
    # Layer 2 (MXU).
    a2 = jnp.dot(w2t, h1, preferred_element_type=jnp.float32)         # (8, tile_b)
    h2 = jnp.tanh(a2 + b2c)
    # Layer 3: N=1 output -> VPU broadcast-multiply + sublane reduce (XLU), not the MXU.
    val = jnp.sum(h2 * w3c, axis=0, keepdims=True) + b3               # (1, tile_b)
    out_ref[...] = val.astype(out_ref.dtype)                          # lane-dense store


def q_network_forward_feature_major(x_fm, params):
    """Forward pass on feature-major input.

    x_fm: (d_in, B), f32 or bf16 (bf16 halves the dominant HBM read; math stays f32).
    Returns (B, 1) float32.
    """
    d_in, B = x_fm.shape
    offs, rows, cols = _param_layout(d_in)
    slab = pack_params(params, d_in)

    tile_b = _choose_tile(B)
    n_tiles = pl.cdiv(B, tile_b)
    b_pad = n_tiles * tile_b
    if b_pad != B:
        # Rare fallback (huge, non-lane-divisible B). Tail rows compute finite garbage
        # and are sliced off below.
        x_fm = jnp.pad(x_fm, ((0, 0), (0, b_pad - B)))

    itemsize = jnp.dtype(x_fm.dtype).itemsize
    cost = pl.CostEstimate(
        flops=2 * B * (d_in * HIDDEN1 + HIDDEN1 * HIDDEN2 + HIDDEN2),
        transcendentals=(HIDDEN1 + HIDDEN2) * B,
        bytes_accessed=B * d_in * itemsize + B * 4 + rows * cols * 4,
    )

    kernel = functools.partial(q_network_kernel, d_in=d_in, offs=offs)
    out = pl.pallas_call(
        kernel,
        out_shape=jax.ShapeDtypeStruct((1, b_pad), jnp.float32),
        grid_spec=pltpu.PrefetchScalarGridSpec(
            num_scalar_prefetch=0,
            grid=(n_tiles,),
            in_specs=[
                # x tile: contiguous lane-dense rows, pipelined over the batch.
                pl.BlockSpec((d_in, tile_b), lambda i: (0, i)),
                # Packed parameter slab: constant index -> stays VMEM-resident.
                pl.BlockSpec((rows, cols), lambda i: (0, 0)),
            ],
            out_specs=pl.BlockSpec((1, tile_b), lambda i: (0, i)),   # lane-dense output
        ),
        compiler_params=pltpu.CompilerParams(
            dimension_semantics=("parallel",),   # v7x: two grid steps -> both TCs busy
        ),
        cost_estimate=cost,
    )(x_fm, slab)
    return out[0, :B][:, None]


def q_network_forward(x, params):
    """PyTorch-equivalent entry point: x (B, d_in) -> (B, 1) float32.

    The transpose below costs one extra HBM round-trip of x; producers should build
    the obs/action feature vector feature-major and call
    q_network_forward_feature_major directly.
    """
    # TODO(synk): push the (B, d_in) -> (d_in, B) layout change into the feature
    # producer (obs/action concat) so this wrapper transpose disappears.
    return q_network_forward_feature_major(x.T, params)


def init_params(key, obs_space_dims, action_space_dims):
    """Deterministic PyTorch-style (uniform +-1/sqrt(fan_in)) init for the 3 Linears."""
    d_in = obs_space_dims + action_space_dims
    dims = [(d_in, HIDDEN1), (HIDDEN1, HIDDEN2), (HIDDEN2, 1)]
    params = []
    for (fan_in, fan_out) in dims:
        key, kw, kb = jax.random.split(key, 3)
        bound = 1.0 / jnp.sqrt(jnp.float32(fan_in))
        w = jax.random.uniform(kw, (fan_in, fan_out), jnp.float32, -bound, bound)
        b = jax.random.uniform(kb, (1, fan_out), jnp.float32, -bound, bound)
        params += [w, b]
    return tuple(params)


def reference_forward(x, params):
    w1, b1, w2, b2, w3, b3 = params
    x = x.astype(jnp.float32)
    h1 = jnp.tanh(x @ w1 + b1)
    h2 = jnp.tanh(h1 @ w2 + b2)
    return h2 @ w3 + b3


if __name__ == "__main__":
    key = jax.random.PRNGKey(0)
    obs_space_dims, action_space_dims = 6, 2   # Q-net input = concat(obs, action)
    d_in = obs_space_dims + action_space_dims
    batch = 64                                 # small demo batch -> single grid step

    kx, kp = jax.random.split(key)
    params = init_params(kp, obs_space_dims, action_space_dims)

    # Feature-major input (d_in, B): the layout the kernel wants from the producer.
    x_fm = jax.random.normal(kx, (d_in, batch), jnp.float32)
    x_bm = x_fm.T                              # (B, d_in) batch-major (PyTorch layout)
    ref = reference_forward(x_bm, params)

    # f32, feature-major path.
    val_fm = q_network_forward_feature_major(x_fm, params)
    jax.block_until_ready(val_fm)
    assert val_fm.shape == (batch, 1)
    assert jnp.allclose(val_fm, ref, atol=1e-4, rtol=1e-4)

    # Batch-major convenience path (PyTorch forward semantics).
    val_bm = q_network_forward(x_bm, params)
    jax.block_until_ready(val_bm)
    assert jnp.allclose(val_bm, ref, atol=1e-4, rtol=1e-4)

    # bf16-input path: halves the dominant HBM read; math is f32 in-kernel.
    x_bf16 = x_fm.astype(jnp.bfloat16)
    val_bf = q_network_forward_feature_major(x_bf16, params)
    jax.block_until_ready(val_bf)
    ref_bf = reference_forward(x_bf16.T, params)
    assert jnp.allclose(val_bf, ref_bf, atol=1e-3, rtol=1e-3)

    # Larger batch: exercises the 2-step "parallel" grid (both v7x TensorCores).
    big = 512
    x_big = jax.random.normal(jax.random.PRNGKey(1), (d_in, big), jnp.float32)
    val_big = q_network_forward_feature_major(x_big, params)
    jax.block_until_ready(val_big)
    assert jnp.allclose(val_big, reference_forward(x_big.T, params), atol=1e-4, rtol=1e-4)

    print("KERNEL_OK")
</pallas_src>

<mosaic_0001>
module attributes {stable_mosaic.version = 11 : i64} {
  func.func @q_network_kernel(%arg0: i32, %arg1: memref<8x64xf32, #tpu.memory_space<vmem>>, %arg2: memref<64x128xf32, #tpu.memory_space<vmem>>, %arg3: memref<1x64xf32, #tpu.memory_space<vmem>>) attributes {dimension_semantics = [#tpu.dimension_semantics<parallel>], iteration_bounds = array<i64: 1>, scalar_prefetch = 0 : i64, scratch_operands = 0 : i64, tpu.core_type = #tpu.core_type<tc>, window_params = [{transform_indices = @transform_0, window_bounds = array<i64: 8, 64>}, {pipeline_mode = #tpu.pipeline_mode<synchronous>, transform_indices = @transform_1, window_bounds = array<i64: 64, 128>}, {transform_indices = @transform_2, window_bounds = array<i64: 1, 64>}]} {
    %c0 = arith.constant 0 : index
    %c0_0 = arith.constant 0 : index
    %0 = vector.load %arg1[%c0, %c0_0] : memref<8x64xf32, #tpu.memory_space<vmem>>, vector<8x64xf32>
    %c0_1 = arith.constant 0 : index
    %c0_2 = arith.constant 0 : index
    %1 = vector.load %arg2[%c0_1, %c0_2] : memref<64x128xf32, #tpu.memory_space<vmem>>, vector<16x8xf32>
    %c16 = arith.constant 16 : index
    %c0_3 = arith.constant 0 : index
    %2 = vector.load %arg2[%c16, %c0_3] : memref<64x128xf32, #tpu.memory_space<vmem>>, vector<8x16xf32>
    %c24 = arith.constant 24 : index
    %c0_4 = arith.constant 0 : index
    %3 = vector.load %arg2[%c24, %c0_4] : memref<64x128xf32, #tpu.memory_space<vmem>>, vector<16x1xf32>
    %c40 = arith.constant 40 : index
    %c0_5 = arith.constant 0 : index
    %4 = vector.load %arg2[%c40, %c0_5] : memref<64x128xf32, #tpu.memory_space<vmem>>, vector<8x1xf32>
    %c48 = arith.constant 48 : index
    %c0_6 = arith.constant 0 : index
    %5 = vector.load %arg2[%c48, %c0_6] : memref<64x128xf32, #tpu.memory_space<vmem>>, vector<8x1xf32>
    %c56 = arith.constant 56 : index
    %c0_7 = arith.constant 0 : index
    %6 = vector.load %arg2[%c56, %c0_7] : memref<64x128xf32, #tpu.memory_space<vmem>>, vector<1x1xf32>
    %cst = arith.constant dense<0.000000e+00> : vector<16x64xf32>
    %7 = tpu.matmul %1, %0, %cst {dimension_numbers = #tpu.dot_dimension_numbers<[1], [0], [0], [1], [0, 0, 1, 1], [], []>} : vector<16x8xf32>, vector<8x64xf32>, vector<16x64xf32> -> vector<16x64xf32>
    %8 = vector.broadcast %3 : vector<16x1xf32> to vector<16x64xf32>
    %9 = arith.addf %7, %8 : vector<16x64xf32>
    %10 = math.tanh %9 : vector<16x64xf32>
    %cst_8 = arith.constant dense<0.000000e+00> : vector<8x64xf32>
    %11 = tpu.matmul %2, %10, %cst_8 {dimension_numbers = #tpu.dot_dimension_numbers<[1], [0], [0], [1], [0, 0, 1, 1], [], []>} : vector<8x16xf32>, vector<16x64xf32>, vector<8x64xf32> -> vector<8x64xf32>
    %12 = vector.broadcast %4 : vector<8x1xf32> to vector<8x64xf32>
    %13 = arith.addf %11, %12 : vector<8x64xf32>
    %14 = math.tanh %13 : vector<8x64xf32>
    %15 = vector.broadcast %5 : vector<8x1xf32> to vector<8x64xf32>
    %16 = arith.mulf %14, %15 : vector<8x64xf32>
    %cst_9 = arith.constant dense<0.000000e+00> : vector<64xf32>
    %17 = vector.multi_reduction <add>, %16, %cst_9 [0] : vector<8x64xf32> to vector<64xf32>
    %18 = vector.shape_cast %17 : vector<64xf32> to vector<1x64xf32>
    %19 = vector.broadcast %6 : vector<1x1xf32> to vector<1x64xf32>
    %20 = arith.addf %18, %19 : vector<1x64xf32>
    %c0_10 = arith.constant 0 : index
    %c0_11 = arith.constant 0 : index
    %21 = vector.load %arg3[%c0_10, %c0_11] : memref<1x64xf32, #tpu.memory_space<vmem>>, vector<1x64xf32>
    tpu.vector_store %arg3[%c0_10, %c0_11], %20 {strides = array<i32>} : memref<1x64xf32, #tpu.memory_space<vmem>>, vector<1x64xf32>,
    return
  }
  func.func @transform_0(%arg0: i32) -> (i32, i32) {
    %c0_i32 = arith.constant 0 : i32
    %c0_i32_0 = arith.constant 0 : i32
    return %c0_i32, %arg0 : i32, i32
  }
  func.func @transform_1(%arg0: i32) -> (i32, i32) {
    %c0_i32 = arith.constant 0 : i32
    %c0_i32_0 = arith.constant 0 : i32
    %c0_i32_1 = arith.constant 0 : i32
    return %c0_i32, %c0_i32_0 : i32, i32
  }
  func.func @transform_2(%arg0: i32) -> (i32, i32) {
    %c0_i32 = arith.constant 0 : i32
    %c0_i32_0 = arith.constant 0 : i32
    return %c0_i32, %arg0 : i32, i32
  }
}

</mosaic_0001>

<bundles_post_ra>
// kernel: tpu_custom_call.1
= control target key start
LH: loop header
LB: loop body
LE: loop exit
PB: predicated region body
PF: predicated region fallthrough
CT: control target
= control target key end

     0   :  { %7 = vsyncpa [#allocation3], 0  ;;  %s290_s0 = inlined_call_operand.hbm [shape: f32[8,64], index: 0, kind: input, shape index: {}]   ;;  %s291_s1 = inlined_call_operand.hbm [shape: f32[64,128], index: 1, kind: input, shape index: {}]   ;;  %s292_s2 = inlined_call_operand.hbm [shape: f32[1,64], index: 2, kind: output, shape index: {}]  }
   0x1   :  { %8 = vsyncpa [#allocation6], 0 }
   0x2   :  { %9 = vsyncpa [#allocation4], 0  ;;  %s15_s11 = sshll.u32 %s290_s0, 4  ;;  %s260_s12 = smov [#allocation2]   ;;  %s16_s11 = int_to_ptr.hbm [resolvable:$true] %s15_s11 }
   0x3   :  { %s17_s13 = sshll.u32 %s260_s12, 4  ;;  %s25_s16 = sshll.u32 %s291_s1, 4  ;;  %s18_s13 = int_to_ptr.vmem [resolvable:$true] %s17_s13  ;;  %s26_s16 = int_to_ptr.hbm [resolvable:$true] %s25_s16 }
   0x4   :  { %20 = dma.hbm_to_vmem [thread:$0]  %s16_s11, 128, %s18_s13, [#allocation3]  }
   0x5   :  { %s261_s17 = smov [#allocation5]   ;;  %s262_s19 = smov 128  }
   0x6   :  { %s27_s18 = sshll.u32 %s261_s17, 4  ;;  %s263_s20 = smov 8   ;;  %s28_s18 = int_to_ptr.vmem [resolvable:$true] %s27_s18 }
   0x7   :  { %33 = dma.hbm_to_vmem [thread:$0]  %s26_s16, 1024, %s28_s18, [#allocation6], %s262_s19, %s262_s19, %s263_s20  }
   0x8   :  { %254 = dma.done.wait [#allocation3], 128  }
   0x9   :  { %255 = vsyncadd [#allocation3], 4294967168 }
   0xa   :  { %256 = dma.done.wait [#allocation6], 1024  }
   0xb   :  { %257 = vsyncadd [#allocation6], 4294966272  ;;  %v264_v0 = vmov 0   ;;  %vm61_vm0 = vcmask 64512   ;;  %v42_v1 = vld [vmem:[#allocation2] sm:$0xff]  ;;  %v43_v2 = vld [vmem:[#allocation5] sm:$0xff] }
   0xc   :  { %173 = vset.pattern.permute.xlu0 %v264_v0  ;;  %174 = vset.pattern.permute.xlu1 %v264_v0  ;;  %v44_v3 = vld [vmem:[#allocation5 + $0x8] sm:$0xff]  ;;  %v47_v4 = vld [vmem:[#allocation5 + $0x20] sm:$0xff]  ;;  %v46_v5 = vld [vmem:[#allocation5 + $0x18] sm:$0xff]  ;;  %vm98_vm1 = vcmask 130048   ;;  %vm129_vm2 = vcmask 523264   ;;  %s265_s0 = smov [#allocation7]  }
   0xd   :  { %175 = vset.pattern.permute.xlu2 %v264_v0  ;;  %83 = vmatpush.msra.mxu0 %v42_v1  ;;  %v48_v6 = vld [vmem:[#allocation5 + $0x28] sm:$0xff]  ;;  %v50_v7 = vld [vmem:[#allocation5 + $0x38] sm:$0x1]  ;;  %v49_v8 = vld [vmem:[#allocation5 + $0x30] sm:$0xff]  ;;  %s150_s1 = sshll.u32 %s265_s0, 4  ;;  %s152_s23 = sshll.u32 %s292_s2, 4  ;;  %s151_s1 = int_to_ptr.vmem [resolvable:$true] %s150_s1  ;;  %s153_s23 = int_to_ptr.hbm [resolvable:$true] %s152_s23 }
   0xe   :  { %166 = vmatpush.msra.mxu2 %v42_v1  ;;  %163 = vmatmul.msk.f32.vlgmr.msra.gmra.mxu0 %vm61_vm0, %v43_v2  ;;  %v45_v16 = vld [vmem:[#allocation5 + $0x10] sm:$0xff]  ;;  %vm143_vm3 = vcmask 516096  }
   0xf   :  { %164 = vmatmul.msk.f32.vlgmr.msra.gmra.mxu2 %vm61_vm0, %v44_v3  ;;  %58 = vperm.xlu0 %173, %v47_v4  }
  0x10   :  { %95 = vperm.xlu1 %174, %v48_v6   ;;  %139 = vperm.xlu2 %175, %v50_v7  }
  0x17   :  { %53 = vperm.xlu0 %173, %v46_v5  }
  0x18   :  { %125 = vperm.xlu1 %174, %v49_v8  }
  0x6a   :  { %v140_v30 = vpop.permute.xlu2 %139 }
  0x81   :  { %v59_v9 = vpop.permute.xlu0 %58 }
  0x82   :  { %v96_v18 = vpop.permute.xlu1 %95 }
  0x89   :  { %v54_v10 = vpop.permute.xlu0 %53 }
  0x8a   :  { %v126_v22 = vpop.permute.xlu1 %125 }
  0x8b   :  { %v85_v11 = vpop.f32.mrf.mxu0 }
  0x8c   :  { %v86_v13 = vadd.f32 %v85_v11, %v54_v10 }
  0x92   :  { %v88_v12 = vpop.f32.mrf.mxu2 }
  0x93   :  { %v89_v14 = vadd.f32 %v88_v12, %v59_v9 }
  0x95   :  { %176 = vtanh.f32 %v89_v14 }
  0x96   :  { %178 = vtanh.f32 %v86_v13 }
  0x9b   :  { %v177_v15 = vpop.eup %176 }
  0x9c   :  { %116 = vmatpush.msra.mxu1 %v177_v15  ;;  %v179_v17 = vpop.eup %178 }
  0x9e   :  { %117 = vmatpush.msra.mxu1 %v179_v17 }
  0x9f   :  { %165 = vmatmul.msk.f32.vlgmr.msra.gmra.mxu1 %vm98_vm1, %v45_v16 }
 0x11c   :  { %v119_v19 = vpop.f32.mrf.mxu1 }
 0x11d   :  { %v120_v20 = vadd.f32 %v119_v19, %v96_v18 }
 0x11f   :  { %180 = vtanh.f32 %v120_v20 }
 0x125   :  { %v181_v21 = vpop.eup %180 }
 0x126   :  { %v128_v23 = vmul.f32 %v181_v21, %v126_v22 }
 0x128   :  { %v130_v24 = vsel %vm129_vm2, %v128_v23, 0.0 }
 0x129   :  { %v131_v25 = vrot.slane %v130_v24, 4 }
 0x12b   :  { %v132_v26 = vadd.f32 %v131_v25, %v130_v24 }
 0x12d   :  { %v133_v27 = vrot.slane %v132_v26, 2 }
 0x12f   :  { %v134_v28 = vadd.f32 %v133_v27, %v132_v26 }
 0x131   :  { %v135_v29 = vrot.slane %v134_v28, 1 }
 0x133   :  { %v136_v31 = vadd.f32 %v135_v29, %v134_v28 }
 0x135   :  { %v142_v32 = vadd.f32 %v140_v30, %v136_v31 }
 0x137   :  { %144 = vst.msk [vmem:[#allocation7] sm:$0x1] %vm143_vm3, %v142_v32 }
 0x138   :  { %155 = dma.vmem_to_hbm [thread:$0]  %s151_s1, 16, %s153_s23, [#allocation4]  }
 0x139   :  { %258 = dma.done.wait [#allocation4], 16  }
 0x13a   :  { %259 = vsyncadd [#allocation4], 4294967280 }
 0x13b   :  { %160 = vsyncpa [#allocation3], 1 }
 0x13c   :  { %161 = vsyncpa [#allocation6], 1 }
 0x13d   :  { %162 = vsyncpa [#allocation4], 1 }

</bundles_post_ra>
